<compile_context>
chip_gen: v7x
topology: tpu7x:2x2x1
jax: 0.10.0
libtpu: 0.0.40
codegen_flags: <defaults>
</compile_context>

<pallas_src>
import jax
import jax.numpy as jnp
from jax.experimental import pallas as pl
from jax.experimental.pallas import tpu as pltpu

NEG_SLOPE = 0.01   # torch.nn.LeakyReLU default
LN_EPS = 1e-5      # torch.nn.LayerNorm default
LANE = 128
SUBLANE = 8


def _leaky_relu(v):
    return jnp.where(v >= 0.0, v, NEG_SLOPE * v)


def _round_up(n, m):
    return ((n + m - 1) // m) * m


def _pad2d(a, rows, cols):
    return jnp.pad(a, ((0, rows - a.shape[0]), (0, cols - a.shape[1])))


def _make_kernel(count_col, out_size):
    """count_col = F_x (index of the fused ones column); out_size = real LayerNorm width."""

    def kernel(batch_ref,   # (1, Nt)        int32, streamed over N
               x_ref,       # (Nt, F_pad)    f32 [x | 1 | 0-pad], streamed over N
               u_ref,       # (B_pad, Fu_pad)
               w0u_ref,     # (Fu_pad, H_pad)
               w0x_ref,     # (F_pad, H_pad)
               b0_ref,      # (1, H_pad)
               w1_ref,      # (H_pad, H_pad)
               b1_ref,      # (1, H_pad)
               w2_ref,      # (H_pad, OUT_pad)
               b2_ref,      # (1, OUT_pad)
               gamma_ref,   # (1, OUT_pad)
               beta_ref,    # (1, OUT_pad)
               out_ref,     # (B_pad, OUT_pad)
               acc_ref):    # VMEM scratch (B_pad, F_pad): [seg_sum | counts | 0]
        k = pl.program_id(0)

        @pl.when(k == 0)
        def _():
            acc_ref[...] = jnp.zeros_like(acc_ref)

        # ---- streamed segment-sum of [x | 1] over this node tile (one-hot matmul) ----
        batch_ids = batch_ref[...]                                   # (1, Nt)
        bp, nt = acc_ref.shape[0], x_ref.shape[0]
        row_ids = jax.lax.broadcasted_iota(jnp.int32, (bp, nt), 0)   # (B_pad, Nt)
        onehot = (row_ids == batch_ids).astype(jnp.float32)          # padded nodes (-1) match nothing
        acc_ref[...] += jnp.dot(onehot, x_ref[...],
                                preferred_element_type=jnp.float32)

        # ---- finalize: divide + MLP + LeakyReLU + LayerNorm, last step only ----
        @pl.when(k == pl.num_programs(0) - 1)
        def _():
            acc = acc_ref[...]
            counts = jnp.maximum(acc[:, count_col:count_col + 1], 1.0)  # (B_pad, 1)
            # Padded feature cols stay 0; the counts column of x_mean becomes 1
            # but its corresponding w0x row is zero-padded, so it contributes 0.
            x_mean = acc / counts

            u = u_ref[...]
            h = (jnp.dot(u, w0u_ref[...], preferred_element_type=jnp.float32)
                 + jnp.dot(x_mean, w0x_ref[...], preferred_element_type=jnp.float32)
                 + b0_ref[...])
            h = _leaky_relu(h)
            h = jnp.dot(h, w1_ref[...], preferred_element_type=jnp.float32) + b1_ref[...]
            h = _leaky_relu(h)
            h = jnp.dot(h, w2_ref[...], preferred_element_type=jnp.float32) + b2_ref[...]
            h = _leaky_relu(h)

            # LayerNorm over the real out_size lanes (padded lanes of h are exactly 0,
            # so the full-lane sum equals the real-lane sum).
            inv_n = 1.0 / out_size
            mu = jnp.sum(h, axis=-1, keepdims=True) * inv_n
            lane = jax.lax.broadcasted_iota(jnp.int32, h.shape, 1)
            mask = (lane < out_size).astype(jnp.float32)
            centered = (h - mu) * mask
            var = jnp.sum(centered * centered, axis=-1, keepdims=True) * inv_n
            hn = centered * jax.lax.rsqrt(var + LN_EPS)
            out_ref[...] = (hn * gamma_ref[...] + beta_ref[...]).astype(out_ref.dtype)

    return kernel


def global_model_forward(x, batch, u, params, out_size, *, node_tile=512):
    """x: [N, F_x] f32, batch: [N] int32 graph ids, u: [B, F_u] f32 -> [B, out_size]."""
    N, F_x = x.shape
    B, F_u = u.shape
    H = params["w1"].shape[0]

    # lane-dense padded widths
    F_pad = _round_up(F_x + 1, LANE)      # +1 fused ones column for counts
    Fu_pad = _round_up(F_u, LANE)
    H_pad = _round_up(H, LANE)
    OUT_pad = _round_up(out_size, LANE)
    B_pad = _round_up(B, SUBLANE)

    # node-axis tiling (reduction grid axis)
    if N <= node_tile:
        Nt = _round_up(max(N, 1), SUBLANE)   # single tile: block == full array, no 128 constraint
        N_pad = Nt
    else:
        Nt = _round_up(node_tile, LANE)      # multi-tile: batch block last dim must be 128-aligned
        N_pad = _round_up(N, Nt)
    num_tiles = N_pad // Nt

    # node features with fused ones column; padded rows are all-zero
    x_aug = jnp.concatenate([x.astype(jnp.float32),
                             jnp.ones((N, 1), jnp.float32)], axis=1)
    x_aug = _pad2d(x_aug, N_pad, F_pad)
    # padded (non-existent) nodes get batch id -1 -> match no graph row
    batch_p = jnp.pad(batch.astype(jnp.int32), (0, N_pad - N),
                      constant_values=-1).reshape(1, N_pad)

    u_p = _pad2d(u.astype(jnp.float32), B_pad, Fu_pad)
    w0u = _pad2d(params["w0u"], Fu_pad, H_pad)
    w0x = _pad2d(params["w0x"], F_pad, H_pad)
    b0 = _pad2d(params["b0"], 1, H_pad)
    w1 = _pad2d(params["w1"], H_pad, H_pad)
    b1 = _pad2d(params["b1"], 1, H_pad)
    w2 = _pad2d(params["w2"], H_pad, OUT_pad)
    b2 = _pad2d(params["b2"], 1, OUT_pad)
    gamma = _pad2d(params["gamma"], 1, OUT_pad)
    beta = _pad2d(params["beta"], 1, OUT_pad)

    stream_batch = lambda k: (0, k)   # batch ids, streamed over N tiles
    stream_nodes = lambda k: (k, 0)   # x_aug,    streamed over N tiles
    resident = lambda k: (0, 0)       # weights/u/out: DMA'd once, stay in VMEM

    in_specs = [
        pl.BlockSpec((1, Nt), stream_batch),
        pl.BlockSpec((Nt, F_pad), stream_nodes),
        pl.BlockSpec((B_pad, Fu_pad), resident),
        pl.BlockSpec((Fu_pad, H_pad), resident),
        pl.BlockSpec((F_pad, H_pad), resident),
        pl.BlockSpec((1, H_pad), resident),
        pl.BlockSpec((H_pad, H_pad), resident),
        pl.BlockSpec((1, H_pad), resident),
        pl.BlockSpec((H_pad, OUT_pad), resident),
        pl.BlockSpec((1, OUT_pad), resident),
        pl.BlockSpec((1, OUT_pad), resident),
        pl.BlockSpec((1, OUT_pad), resident),
    ]
    out_specs = pl.BlockSpec((B_pad, OUT_pad), resident)

    kernel = _make_kernel(count_col=F_x, out_size=out_size)

    out_p = pl.pallas_call(
        kernel,
        out_shape=jax.ShapeDtypeStruct((B_pad, OUT_pad), jnp.float32),
        grid=(num_tiles,),
        in_specs=in_specs,
        out_specs=out_specs,
        scratch_shapes=[pltpu.VMEM((B_pad, F_pad), jnp.float32)],
        compiler_params=pltpu.CompilerParams(
            dimension_semantics=("arbitrary",),          # N is a reduction axis
            vmem_limit_bytes=32 * 1024 * 1024),          # safe on v5e/v6e/v7x
    )(batch_p, x_aug, u_p, w0u, w0x, b0, w1, b1, w2, b2, gamma, beta)

    return out_p[:B, :out_size]


def _reference_forward(x, batch, u, params):
    """Pure-JAX reference mirroring the PyTorch module."""
    B = u.shape[0]
    onehot = (jnp.arange(B)[:, None] == batch[None, :]).astype(jnp.float32)
    seg_sum = onehot @ x
    counts = jnp.maximum(onehot.sum(axis=1, keepdims=True), 1.0)
    x_mean = seg_sum / counts
    h = jnp.concatenate([u, x_mean], axis=1)
    w0 = jnp.concatenate([params["w0u"], params["w0x"]], axis=0)
    h = _leaky_relu(h @ w0 + params["b0"])
    h = _leaky_relu(h @ params["w1"] + params["b1"])
    h = h @ params["w2"] + params["b2"]
    h = _leaky_relu(h)
    mu = h.mean(axis=-1, keepdims=True)
    var = ((h - mu) ** 2).mean(axis=-1, keepdims=True)
    h = (h - mu) * jax.lax.rsqrt(var + LN_EPS)
    return h * params["gamma"] + params["beta"]


if __name__ == "__main__":
    # GlobalModel(in_size=F_u+F_x, out_size, n_hidden=2, hidden_size,
    #             activation=LeakyReLU, activate_last=True, layer_norm=True)
    N, B = 300, 2        # nodes, graphs (node_tile=128 below -> 3 reduction tiles)
    F_x, F_u = 4, 4
    hidden_size = 32
    out_size = 16

    key = jax.random.PRNGKey(0)
    ks = jax.random.split(key, 8)

    x = jax.random.normal(ks[0], (N, F_x), dtype=jnp.float32)
    u = jax.random.normal(ks[1], (B, F_u), dtype=jnp.float32)
    batch = jnp.concatenate([jnp.zeros((140,), jnp.int32),
                             jnp.ones((160,), jnp.int32)])

    params = {
        # first Linear(in_size, hidden) split into its u-rows and x_mean-rows
        "w0u": 0.2 * jax.random.normal(ks[2], (F_u, hidden_size), dtype=jnp.float32),
        "w0x": 0.2 * jax.random.normal(ks[3], (F_x, hidden_size), dtype=jnp.float32),
        "b0": 0.1 * jnp.ones((1, hidden_size), dtype=jnp.float32),
        "w1": 0.2 * jax.random.normal(ks[4], (hidden_size, hidden_size), dtype=jnp.float32),
        "b1": 0.1 * jnp.ones((1, hidden_size), dtype=jnp.float32),
        "w2": 0.2 * jax.random.normal(ks[5], (hidden_size, out_size), dtype=jnp.float32),
        "b2": 0.1 * jnp.ones((1, out_size), dtype=jnp.float32),
        "gamma": jnp.ones((1, out_size), dtype=jnp.float32),
        "beta": jnp.zeros((1, out_size), dtype=jnp.float32),
    }

    # multi-tile reduction path (3 node tiles)
    out = global_model_forward(x, batch, u, params, out_size, node_tile=128)
    out = jax.block_until_ready(out)
    ref = _reference_forward(x, batch, u, params)
    assert out.shape == (B, out_size)
    assert jnp.allclose(out, ref, atol=1e-4, rtol=1e-4), "mismatch vs reference (multi-tile)"

    # single-tile path (whole node axis in one block)
    out1 = global_model_forward(x, batch, u, params, out_size, node_tile=512)
    out1 = jax.block_until_ready(out1)
    assert jnp.allclose(out1, ref, atol=1e-4, rtol=1e-4), "mismatch vs reference (single-tile)"

    print("KERNEL_OK")
</pallas_src>

<mosaic_0001>
module attributes {stable_mosaic.version = 11 : i64} {
  func.func @kernel(%arg0: i32, %arg1: memref<1x128xi32, #tpu.memory_space<vmem>>, %arg2: memref<128x128xf32, #tpu.memory_space<vmem>>, %arg3: memref<8x128xf32, #tpu.memory_space<vmem>>, %arg4: memref<128x128xf32, #tpu.memory_space<vmem>>, %arg5: memref<128x128xf32, #tpu.memory_space<vmem>>, %arg6: memref<1x128xf32, #tpu.memory_space<vmem>>, %arg7: memref<128x128xf32, #tpu.memory_space<vmem>>, %arg8: memref<1x128xf32, #tpu.memory_space<vmem>>, %arg9: memref<128x128xf32, #tpu.memory_space<vmem>>, %arg10: memref<1x128xf32, #tpu.memory_space<vmem>>, %arg11: memref<1x128xf32, #tpu.memory_space<vmem>>, %arg12: memref<1x128xf32, #tpu.memory_space<vmem>>, %arg13: memref<8x128xf32, #tpu.memory_space<vmem>>, %arg14: memref<8x128xf32, #tpu.memory_space<vmem>>) attributes {dimension_semantics = [#tpu.dimension_semantics<arbitrary>], iteration_bounds = array<i64: 3>, scalar_prefetch = 0 : i64, scratch_operands = 1 : i64, tpu.core_type = #tpu.core_type<tc>, window_params = [{transform_indices = @transform_0, window_bounds = array<i64: 1, 128>}, {transform_indices = @transform_1, window_bounds = array<i64: 128, 128>}, {pipeline_mode = #tpu.pipeline_mode<synchronous>, transform_indices = @transform_2, window_bounds = array<i64: 8, 128>}, {pipeline_mode = #tpu.pipeline_mode<synchronous>, transform_indices = @transform_3, window_bounds = array<i64: 128, 128>}, {pipeline_mode = #tpu.pipeline_mode<synchronous>, transform_indices = @transform_4, window_bounds = array<i64: 128, 128>}, {pipeline_mode = #tpu.pipeline_mode<synchronous>, transform_indices = @transform_5, window_bounds = array<i64: 1, 128>}, {pipeline_mode = #tpu.pipeline_mode<synchronous>, transform_indices = @transform_6, window_bounds = array<i64: 128, 128>}, {pipeline_mode = #tpu.pipeline_mode<synchronous>, transform_indices = @transform_7, window_bounds = array<i64: 1, 128>}, {pipeline_mode = #tpu.pipeline_mode<synchronous>, transform_indices = @transform_8, window_bounds = array<i64: 128, 128>}, {pipeline_mode = #tpu.pipeline_mode<synchronous>, transform_indices = @transform_9, window_bounds = array<i64: 1, 128>}, {pipeline_mode = #tpu.pipeline_mode<synchronous>, transform_indices = @transform_10, window_bounds = array<i64: 1, 128>}, {pipeline_mode = #tpu.pipeline_mode<synchronous>, transform_indices = @transform_11, window_bounds = array<i64: 1, 128>}, {pipeline_mode = #tpu.pipeline_mode<synchronous>, transform_indices = @transform_12, window_bounds = array<i64: 8, 128>}]} {
    %c0_i32 = arith.constant 0 : i32
    %0 = arith.cmpi eq, %arg0, %c0_i32 : i32
    %1 = arith.extui %0 : i1 to i32
    %c0_i32_0 = arith.constant 0 : i32
    %2 = arith.cmpi ne, %1, %c0_i32_0 : i32
    scf.if %2 {
      %cst_9 = arith.constant 0.000000e+00 : f32
      %17 = vector.broadcast %cst_9 : f32 to vector<8x128xf32>
      %c0_10 = arith.constant 0 : index
      %c0_11 = arith.constant 0 : index
      %18 = vector.load %arg14[%c0_10, %c0_11] : memref<8x128xf32, #tpu.memory_space<vmem>>, vector<8x128xf32>
      tpu.vector_store %arg14[%c0_10, %c0_11], %17 {strides = array<i32>} : memref<8x128xf32, #tpu.memory_space<vmem>>, vector<8x128xf32>,
    } else {
    }
    %c0 = arith.constant 0 : index
    %c0_1 = arith.constant 0 : index
    %3 = vector.load %arg1[%c0, %c0_1] : memref<1x128xi32, #tpu.memory_space<vmem>>, vector<1x128xi32>
    %4 = tpu.iota {dimensions = array<i32: 0>} : vector<8x128xi32>
    %5 = vector.broadcast %3 : vector<1x128xi32> to vector<8x128xi32>
    %6 = arith.cmpi eq, %4, %5 : vector<8x128xi32>
    %7 = arith.extui %6 : vector<8x128xi1> to vector<8x128xi32>
    %8 = arith.sitofp %7 : vector<8x128xi32> to vector<8x128xf32>
    %c0_2 = arith.constant 0 : index
    %c0_3 = arith.constant 0 : index
    %9 = vector.load %arg14[%c0_2, %c0_3] : memref<8x128xf32, #tpu.memory_space<vmem>>, vector<8x128xf32>
    %c0_4 = arith.constant 0 : index
    %c0_5 = arith.constant 0 : index
    %10 = vector.load %arg2[%c0_4, %c0_5] : memref<128x128xf32, #tpu.memory_space<vmem>>, vector<128x128xf32>
    %cst = arith.constant dense<0.000000e+00> : vector<8x128xf32>
    %11 = tpu.matmul %8, %10, %cst {dimension_numbers = #tpu.dot_dimension_numbers<[1], [0], [0], [1], [0, 0, 1, 1], [], []>} : vector<8x128xf32>, vector<128x128xf32>, vector<8x128xf32> -> vector<8x128xf32>
    %12 = arith.addf %9, %11 : vector<8x128xf32>
    %c0_6 = arith.constant 0 : index
    %c0_7 = arith.constant 0 : index
    %13 = vector.load %arg14[%c0_6, %c0_7] : memref<8x128xf32, #tpu.memory_space<vmem>>, vector<8x128xf32>
    tpu.vector_store %arg14[%c0_6, %c0_7], %12 {strides = array<i32>} : memref<8x128xf32, #tpu.memory_space<vmem>>, vector<8x128xf32>,
    %c2_i32 = arith.constant 2 : i32
    %14 = arith.cmpi eq, %arg0, %c2_i32 : i32
    %15 = arith.extui %14 : i1 to i32
    %c0_i32_8 = arith.constant 0 : i32
    %16 = arith.cmpi ne, %15, %c0_i32_8 : i32
    scf.if %16 {
      %c0_9 = arith.constant 0 : index
      %c0_10 = arith.constant 0 : index
      %17 = vector.load %arg14[%c0_9, %c0_10] : memref<8x128xf32, #tpu.memory_space<vmem>>, vector<8x128xf32>
      %18 = vector.extract_strided_slice %17 {offsets = [0, 4], sizes = [8, 1], strides = [1, 1]} : vector<8x128xf32> to vector<8x1xf32>
      %cst_11 = arith.constant 1.000000e+00 : f32
      %19 = vector.broadcast %cst_11 : f32 to vector<8x1xf32>
      %20 = arith.maximumf %18, %19 : vector<8x1xf32>
      %21 = vector.broadcast %20 : vector<8x1xf32> to vector<8x128xf32>
      %22 = arith.divf %17, %21 : vector<8x128xf32>
      %c0_12 = arith.constant 0 : index
      %c0_13 = arith.constant 0 : index
      %23 = vector.load %arg3[%c0_12, %c0_13] : memref<8x128xf32, #tpu.memory_space<vmem>>, vector<8x128xf32>
      %c0_14 = arith.constant 0 : index
      %c0_15 = arith.constant 0 : index
      %24 = vector.load %arg4[%c0_14, %c0_15] : memref<128x128xf32, #tpu.memory_space<vmem>>, vector<128x128xf32>
      %cst_16 = arith.constant dense<0.000000e+00> : vector<8x128xf32>
      %25 = tpu.matmul %23, %24, %cst_16 {dimension_numbers = #tpu.dot_dimension_numbers<[1], [0], [0], [1], [0, 0, 1, 1], [], []>} : vector<8x128xf32>, vector<128x128xf32>, vector<8x128xf32> -> vector<8x128xf32>
      %c0_17 = arith.constant 0 : index
      %c0_18 = arith.constant 0 : index
      %26 = vector.load %arg5[%c0_17, %c0_18] : memref<128x128xf32, #tpu.memory_space<vmem>>, vector<128x128xf32>
      %cst_19 = arith.constant dense<0.000000e+00> : vector<8x128xf32>
      %27 = tpu.matmul %22, %26, %cst_19 {dimension_numbers = #tpu.dot_dimension_numbers<[1], [0], [0], [1], [0, 0, 1, 1], [], []>} : vector<8x128xf32>, vector<128x128xf32>, vector<8x128xf32> -> vector<8x128xf32>
      %28 = arith.addf %25, %27 : vector<8x128xf32>
      %c0_20 = arith.constant 0 : index
      %c0_21 = arith.constant 0 : index
      %29 = vector.load %arg6[%c0_20, %c0_21] : memref<1x128xf32, #tpu.memory_space<vmem>>, vector<1x128xf32>
      %30 = vector.broadcast %29 : vector<1x128xf32> to vector<8x128xf32>
      %31 = arith.addf %28, %30 : vector<8x128xf32>
      %cst_22 = arith.constant 0.000000e+00 : f32
      %32 = vector.broadcast %cst_22 : f32 to vector<8x128xf32>
      %33 = arith.cmpf oge, %31, %32 : vector<8x128xf32>
      %cst_23 = arith.constant 0.00999999977 : f32
      %34 = vector.broadcast %cst_23 : f32 to vector<8x128xf32>
      %35 = arith.mulf %34, %31 : vector<8x128xf32>
      %36 = arith.select %33, %31, %35 : vector<8x128xi1>, vector<8x128xf32>
      %c0_24 = arith.constant 0 : index
      %c0_25 = arith.constant 0 : index
      %37 = vector.load %arg7[%c0_24, %c0_25] : memref<128x128xf32, #tpu.memory_space<vmem>>, vector<128x128xf32>
      %cst_26 = arith.constant dense<0.000000e+00> : vector<8x128xf32>
      %38 = tpu.matmul %36, %37, %cst_26 {dimension_numbers = #tpu.dot_dimension_numbers<[1], [0], [0], [1], [0, 0, 1, 1], [], []>} : vector<8x128xf32>, vector<128x128xf32>, vector<8x128xf32> -> vector<8x128xf32>
      %c0_27 = arith.constant 0 : index
      %c0_28 = arith.constant 0 : index
      %39 = vector.load %arg8[%c0_27, %c0_28] : memref<1x128xf32, #tpu.memory_space<vmem>>, vector<1x128xf32>
      %40 = vector.broadcast %39 : vector<1x128xf32> to vector<8x128xf32>
      %41 = arith.addf %38, %40 : vector<8x128xf32>
      %cst_29 = arith.constant 0.000000e+00 : f32
      %42 = vector.broadcast %cst_29 : f32 to vector<8x128xf32>
      %43 = arith.cmpf oge, %41, %42 : vector<8x128xf32>
      %cst_30 = arith.constant 0.00999999977 : f32
      %44 = vector.broadcast %cst_30 : f32 to vector<8x128xf32>
      %45 = arith.mulf %44, %41 : vector<8x128xf32>
      %46 = arith.select %43, %41, %45 : vector<8x128xi1>, vector<8x128xf32>
      %c0_31 = arith.constant 0 : index
      %c0_32 = arith.constant 0 : index
      %47 = vector.load %arg9[%c0_31, %c0_32] : memref<128x128xf32, #tpu.memory_space<vmem>>, vector<128x128xf32>
      %cst_33 = arith.constant dense<0.000000e+00> : vector<8x128xf32>
      %48 = tpu.matmul %46, %47, %cst_33 {dimension_numbers = #tpu.dot_dimension_numbers<[1], [0], [0], [1], [0, 0, 1, 1], [], []>} : vector<8x128xf32>, vector<128x128xf32>, vector<8x128xf32> -> vector<8x128xf32>
      %c0_34 = arith.constant 0 : index
      %c0_35 = arith.constant 0 : index
      %49 = vector.load %arg10[%c0_34, %c0_35] : memref<1x128xf32, #tpu.memory_space<vmem>>, vector<1x128xf32>
      %50 = vector.broadcast %49 : vector<1x128xf32> to vector<8x128xf32>
      %51 = arith.addf %48, %50 : vector<8x128xf32>
      %cst_36 = arith.constant 0.000000e+00 : f32
      %52 = vector.broadcast %cst_36 : f32 to vector<8x128xf32>
      %53 = arith.cmpf oge, %51, %52 : vector<8x128xf32>
      %cst_37 = arith.constant 0.00999999977 : f32
      %54 = vector.broadcast %cst_37 : f32 to vector<8x128xf32>
      %55 = arith.mulf %54, %51 : vector<8x128xf32>
      %56 = arith.select %53, %51, %55 : vector<8x128xi1>, vector<8x128xf32>
      %cst_38 = arith.constant dense<0.000000e+00> : vector<8xf32>
      %57 = vector.multi_reduction <add>, %56, %cst_38 [1] : vector<8x128xf32> to vector<8xf32>
      %58 = vector.shape_cast %57 : vector<8xf32> to vector<8x1xf32>
      %cst_39 = arith.constant 6.250000e-02 : f32
      %59 = vector.broadcast %cst_39 : f32 to vector<8x1xf32>
      %60 = arith.mulf %58, %59 : vector<8x1xf32>
      %61 = tpu.iota {dimensions = array<i32: 1>} : vector<8x128xi32>
      %c16_i32 = arith.constant 16 : i32
      %62 = vector.broadcast %c16_i32 : i32 to vector<8x128xi32>
      %63 = arith.cmpi slt, %61, %62 : vector<8x128xi32>
      %64 = arith.extui %63 : vector<8x128xi1> to vector<8x128xi32>
      %65 = arith.sitofp %64 : vector<8x128xi32> to vector<8x128xf32>
      %66 = vector.broadcast %60 : vector<8x1xf32> to vector<8x128xf32>
      %67 = arith.subf %56, %66 : vector<8x128xf32>
      %68 = arith.mulf %67, %65 : vector<8x128xf32>
      %69 = arith.mulf %68, %68 : vector<8x128xf32>
      %cst_40 = arith.constant dense<0.000000e+00> : vector<8xf32>
      %70 = vector.multi_reduction <add>, %69, %cst_40 [1] : vector<8x128xf32> to vector<8xf32>
      %71 = vector.shape_cast %70 : vector<8xf32> to vector<8x1xf32>
      %cst_41 = arith.constant 6.250000e-02 : f32
      %72 = vector.broadcast %cst_41 : f32 to vector<8x1xf32>
      %73 = arith.mulf %71, %72 : vector<8x1xf32>
      %cst_42 = arith.constant 9.99999974E-6 : f32
      %74 = vector.broadcast %cst_42 : f32 to vector<8x1xf32>
      %75 = arith.addf %73, %74 : vector<8x1xf32>
      %76 = math.rsqrt %75 : vector<8x1xf32>
      %77 = vector.broadcast %76 : vector<8x1xf32> to vector<8x128xf32>
      %78 = arith.mulf %68, %77 : vector<8x128xf32>
      %c0_43 = arith.constant 0 : index
      %c0_44 = arith.constant 0 : index
      %79 = vector.load %arg11[%c0_43, %c0_44] : memref<1x128xf32, #tpu.memory_space<vmem>>, vector<1x128xf32>
      %80 = vector.broadcast %79 : vector<1x128xf32> to vector<8x128xf32>
      %81 = arith.mulf %78, %80 : vector<8x128xf32>
      %c0_45 = arith.constant 0 : index
      %c0_46 = arith.constant 0 : index
      %82 = vector.load %arg12[%c0_45, %c0_46] : memref<1x128xf32, #tpu.memory_space<vmem>>, vector<1x128xf32>
      %83 = vector.broadcast %82 : vector<1x128xf32> to vector<8x128xf32>
      %84 = arith.addf %81, %83 : vector<8x128xf32>
      %c0_47 = arith.constant 0 : index
      %c0_48 = arith.constant 0 : index
      %85 = vector.load %arg13[%c0_47, %c0_48] : memref<8x128xf32, #tpu.memory_space<vmem>>, vector<8x128xf32>
      tpu.vector_store %arg13[%c0_47, %c0_48], %84 {strides = array<i32>} : memref<8x128xf32, #tpu.memory_space<vmem>>, vector<8x128xf32>,
    } else {
    }
    return
  }
  func.func @transform_0(%arg0: i32) -> (i32, i32) {
    %c0_i32 = arith.constant 0 : i32
    %c0_i32_0 = arith.constant 0 : i32
    return %c0_i32, %arg0 : i32, i32
  }
  func.func @transform_1(%arg0: i32) -> (i32, i32) {
    %c0_i32 = arith.constant 0 : i32
    %c0_i32_0 = arith.constant 0 : i32
    return %arg0, %c0_i32 : i32, i32
  }
  func.func @transform_2(%arg0: i32) -> (i32, i32) {
    %c0_i32 = arith.constant 0 : i32
    %c0_i32_0 = arith.constant 0 : i32
    %c0_i32_1 = arith.constant 0 : i32
    return %c0_i32, %c0_i32_0 : i32, i32
  }
  func.func @transform_3(%arg0: i32) -> (i32, i32) {
    %c0_i32 = arith.constant 0 : i32
    %c0_i32_0 = arith.constant 0 : i32
    %c0_i32_1 = arith.constant 0 : i32
    return %c0_i32, %c0_i32_0 : i32, i32
  }
  func.func @transform_4(%arg0: i32) -> (i32, i32) {
    %c0_i32 = arith.constant 0 : i32
    %c0_i32_0 = arith.constant 0 : i32
    %c0_i32_1 = arith.constant 0 : i32
    return %c0_i32, %c0_i32_0 : i32, i32
  }
  func.func @transform_5(%arg0: i32) -> (i32, i32) {
    %c0_i32 = arith.constant 0 : i32
    %c0_i32_0 = arith.constant 0 : i32
    %c0_i32_1 = arith.constant 0 : i32
    return %c0_i32, %c0_i32_0 : i32, i32
  }
  func.func @transform_6(%arg0: i32) -> (i32, i32) {
    %c0_i32 = arith.constant 0 : i32
    %c0_i32_0 = arith.constant 0 : i32
    %c0_i32_1 = arith.constant 0 : i32
    return %c0_i32, %c0_i32_0 : i32, i32
  }
  func.func @transform_7(%arg0: i32) -> (i32, i32) {
    %c0_i32 = arith.constant 0 : i32
    %c0_i32_0 = arith.constant 0 : i32
    %c0_i32_1 = arith.constant 0 : i32
    return %c0_i32, %c0_i32_0 : i32, i32
  }
  func.func @transform_8(%arg0: i32) -> (i32, i32) {
    %c0_i32 = arith.constant 0 : i32
    %c0_i32_0 = arith.constant 0 : i32
    %c0_i32_1 = arith.constant 0 : i32
    return %c0_i32, %c0_i32_0 : i32, i32
  }
  func.func @transform_9(%arg0: i32) -> (i32, i32) {
    %c0_i32 = arith.constant 0 : i32
    %c0_i32_0 = arith.constant 0 : i32
    %c0_i32_1 = arith.constant 0 : i32
    return %c0_i32, %c0_i32_0 : i32, i32
  }
  func.func @transform_10(%arg0: i32) -> (i32, i32) {
    %c0_i32 = arith.constant 0 : i32
    %c0_i32_0 = arith.constant 0 : i32
    %c0_i32_1 = arith.constant 0 : i32
    return %c0_i32, %c0_i32_0 : i32, i32
  }
  func.func @transform_11(%arg0: i32) -> (i32, i32) {
    %c0_i32 = arith.constant 0 : i32
    %c0_i32_0 = arith.constant 0 : i32
    %c0_i32_1 = arith.constant 0 : i32
    return %c0_i32, %c0_i32_0 : i32, i32
  }
  func.func @transform_12(%arg0: i32) -> (i32, i32) {
    %c0_i32 = arith.constant 0 : i32
    %c0_i32_0 = arith.constant 0 : i32
    %c0_i32_1 = arith.constant 0 : i32
    return %c0_i32, %c0_i32_0 : i32, i32
  }
}

</mosaic_0001>

<bundles_post_ra>
// kernel: tpu_custom_call.1
= control target key start
LH: loop header
LB: loop body
LE: loop exit
PB: predicated region body
PF: predicated region fallthrough
CT: control target
= control target key end

     0   :  { %s2495_s0 = inlined_call_operand.hbm [shape: s32[1,384], index: 0, kind: input, shape index: {}]   ;;  %s2496_s1 = inlined_call_operand.hbm [shape: f32[384,128], index: 1, kind: input, shape index: {}]   ;;  %s2497_s2 = inlined_call_operand.hbm [shape: f32[8,128], index: 2, kind: input, shape index: {}]   ;;  %s2498_s3 = inlined_call_operand.hbm [shape: f32[128,128], index: 3, kind: input, shape index: {}]   ;;  %s2499_s4 = inlined_call_operand.hbm [shape: f32[128,128], index: 4, kind: input, shape index: {}]   ;;  %s2500_s5 = inlined_call_operand.vmem [shape: f32[1,128], index: 5, kind: input, shape index: {}]   ;;  %s2501_s6 = inlined_call_operand.hbm [shape: f32[128,128], index: 6, kind: input, shape index: {}]   ;;  %s2502_s7 = inlined_call_operand.vmem [shape: f32[1,128], index: 7, kind: input, shape index: {}]   ;;  %s2503_s8 = inlined_call_operand.hbm [shape: f32[128,128], index: 8, kind: input, shape index: {}]   ;;  %s2504_s9 = inlined_call_operand.vmem [shape: f32[1,128], index: 9, kind: input, shape index: {}]   ;;  %s2505_s10 = inlined_call_operand.vmem [shape: f32[1,128], index: 10, kind: input, shape index: {}]   ;;  %s2506_s11 = inlined_call_operand.vmem [shape: f32[1,128], index: 11, kind: input, shape index: {}]   ;;  %s2507_s12 = inlined_call_operand.hbm [shape: f32[8,128], index: 12, kind: output, shape index: {}]  }
   0x1   :  { %2513 = sst [smem:[#allocation22_spill]] %s2497_s2 }
   0x2   :  { %2514 = sst [smem:[#allocation23_spill]] %s2498_s3 }
   0x3   :  { %2515 = sst [smem:[#allocation24_spill]] %s2505_s10 }
   0x4   :  { %2516 = sst [smem:[#allocation25_spill]] %s2506_s11 }
   0x5   :  { %2517 = sst [smem:[#allocation26_spill]] %s2507_s12 }
   0x6   :  { %17 = vsyncpa [#allocation4], 0 }
   0x7   :  { %19 = vsyncpa [#allocation4 + $0x1], 0 }
   0x8   :  { %20 = vsyncpa [#allocation7], 0 }
   0x9   :  { %22 = vsyncpa [#allocation7 + $0x1], 0 }
   0xa   :  { %23 = vsyncpa [#allocation10], 0 }
   0xb   :  { %24 = vsyncpa [#allocation13], 0 }
   0xc   :  { %25 = vsyncpa [#allocation5], 0  ;;  %s2075_s21 = smov 0   ;;  %s2077_s22 = smov 0  }
   0xd   :  { %s2079_s23 = smov 0   ;;  %s2081_s24 = smov 0  }
   0xe LB: > { %s1991_s25 = smov [#allocation8]   ;;  %s2096_s27 = sadd.s32 4294967295, %s1989_s24   ;;  %s1989_s24 = sphi %s2081_s24, %s2542_s24   ;;  %s1985_s23 = sphi %s2079_s23, %s2541_s23   ;;  %s1981_s22 = sphi %s2077_s22, %s2540_s22   ;;  %s1977_s21 = sphi %s2075_s21, %s2539_s21  }
   0xf   : > { %s332_s26 = sshll.u32 %s1991_s25, 4  ;;  %p1177_p0 = scmp.ge.s32.totalorder %s1989_s24, 1  ;;  %s333_s26 = int_to_ptr.vmem [resolvable:$true] %s332_s26 }
  0x10   : > { %p2508_p1 = scmp.eq.s32.totalorder %s2096_s27, 0  ;;  %p319_p2 = scmp.lt.s32.totalorder %s1989_s24, 4 }
  0x11   : > { %s1992_s29 = smov [#allocation9]   ;;  %s1993_s14 = smov [#allocation12]  }
  0x12   : > { %p2102_p4 = pnand %p1177_p0, %p319_p2  ;;  %s342_s30 = sshll.u32 %s1992_s29, 4  ;;  %s2108_s30 = int_to_ptr.vmem [resolvable:$true] %s342_s30 }
  0x13   : > { %s371_s15 = sshll.u32 %s1993_s14, 4  ;;  %s2520_s2 = sld [smem:[#allocation22_spill]]  ;;  %s2116_s15 = int_to_ptr.vmem [resolvable:$true] %s371_s15 }
  0x14   : > { %s2518_s28 = scalar_select %p2102_p4, 1, 0 }
  0x15   : > { %p1619_p5 = pneg %p2102_p4 }
  0x17   : > { %p2112_p6 = pnand %p1619_p5, %p2508_p1 }
  0x19   : > { %s1709_s18 = scalar_lea.hbm %s2520_s2, 128  ;;  %p2126_p8 = pneg %p2112_p6 }
  0x1a   : > { %p1710_p7 = scmp.ne.s32.totalorder %s2520_s2, %s1709_s18  ;;  %p1716_p11 = scmp.lt.u32.totalorder %s1709_s18, %s2520_s2 }
  0x1c   : > { %p1712_p9 = pnand %p2126_p8, %p1710_p7 }
  0x1e   : > { %p1713_p10 = pneg %p1712_p9 }
  0x20   : > { %p1718_p12 = pnand %p1716_p11, %p1713_p10 }
  0x22   : > { %1721 = shalt.err (!%p1718_p12)
}
  0x23   : > { %s1722_s16 = scalar_lea.vmem %s333_s26, 128  ;;  %p1730_p5 = scmp.lt.s32.totalorder %s333_s26, %s333_s26 }
  0x24   : > { %p1723_p13 = scmp.ne.s32.totalorder %s333_s26, %s1722_s16  ;;  %p1731_p3 = scmp.lt.s32.totalorder %s1722_s16, %s1722_s16 }
  0x26   : > { %p1725_p0 = pnand %p1723_p13, %p2126_p8  ;;  %p1732_p1 = por %p1731_p3, %p1730_p5 }
  0x28   : > { %p1726_p2 = pneg %p1725_p0 }
  0x2a   : > { %p1733_p4 = pnand %p1732_p1, %p1726_p2 }
  0x2c   : > { %1736 = shalt.err (!%p1733_p4)
}
  0x2d   : > { %1622 = dma.hbm_to_vmem [thread:$0]  (!%p2112_p6), %s2520_s2, 128, %s333_s26, [#allocation7]  }
  0x2e   : > { %s2522_s3 = sld [smem:[#allocation23_spill]] }
  0x34   : > { %s1737_s29 = scalar_lea.hbm %s2522_s3, 2048 }
  0x35   : > { %p1738_p7 = scmp.ne.s32.totalorder %s2522_s3, %s1737_s29  ;;  %p1744_p1 = scmp.lt.u32.totalorder %s1737_s29, %s2522_s3 }
  0x37   : > { %p1740_p9 = pnand %p1738_p7, %p2126_p8 }
  0x39   : > { %p1741_p3 = pneg %p1740_p9 }
  0x3b   : > { %p1746_p4 = pnand %p1744_p1, %p1741_p3 }
  0x3d   : > { %1749 = shalt.err (!%p1746_p4)
}
  0x3e   : > { %s1750_s26 = scalar_lea.vmem %s2108_s30, 2048  ;;  %p1758_p13 = scmp.lt.s32.totalorder %s2108_s30, %s2108_s30 }
  0x3f   : > { %p1751_p10 = scmp.ne.s32.totalorder %s2108_s30, %s1750_s26  ;;  %p1759_p0 = scmp.lt.s32.totalorder %s1750_s26, %s1750_s26 }
  0x41   : > { %p1753_p11 = pnand %p1751_p10, %p2126_p8  ;;  %p1760_p2 = por %p1759_p0, %p1758_p13 }
  0x43   : > { %p1754_p12 = pneg %p1753_p11 }
  0x45   : > { %p1761_p5 = pnand %p1760_p2, %p1754_p12 }
  0x47   : > { %1764 = shalt.err (!%p1761_p5)
}
  0x48   : > { %s2511_s12 = smov 128   ;;  %s2512_s11 = smov 8  }
  0x49   : > { %1625 = dma.hbm_to_vmem [thread:$0]  (!%p2112_p6), %s2522_s3, 2048, %s2108_s30, [#allocation10], %s2511_s12, %s2511_s12, %s2512_s11  }
  0x4a   : > { %s1765_s29 = scalar_lea.hbm %s2501_s6, 2048 }
  0x4b   : > { %p1766_p7 = scmp.ne.s32.totalorder %s2501_s6, %s1765_s29  ;;  %p1772_p1 = scmp.lt.u32.totalorder %s1765_s29, %s2501_s6 }
  0x4d   : > { %p1768_p9 = pnand %p1766_p7, %p2126_p8 }
  0x4f   : > { %p1769_p3 = pneg %p1768_p9 }
  0x51   : > { %p1774_p4 = pnand %p1772_p1, %p1769_p3 }
  0x53   : > { %1777 = shalt.err (!%p1774_p4)
}
  0x54   : > { %s1778_s30 = scalar_lea.vmem %s2116_s15, 2048  ;;  %p1786_p13 = scmp.lt.s32.totalorder %s2116_s15, %s2116_s15 }
  0x55   : > { %p1779_p10 = scmp.ne.s32.totalorder %s2116_s15, %s1778_s30  ;;  %p1787_p0 = scmp.lt.s32.totalorder %s1778_s30, %s1778_s30 }
  0x57   : > { %p1781_p11 = pnand %p1779_p10, %p2126_p8  ;;  %p1788_p2 = por %p1787_p0, %p1786_p13 }
  0x59   : > { %p1782_p12 = pneg %p1781_p11 }
  0x5b   : > { %p1789_p5 = pnand %p1788_p2, %p1782_p12 }
  0x5d   : > { %1792 = shalt.err (!%p1789_p5)
}
  0x5e   : > { %1631 = dma.hbm_to_vmem [thread:$0]  (!%p2112_p6), %s2501_s6, 2048, %s2116_s15, [#allocation13], %s2511_s12, %s2511_s12, %s2512_s11  }
  0x5f   : > { %s1996_s19 = smov [#allocation11]   ;;  %s1997_s20 = smov [#allocation14]  }
  0x60   : > { %s355_s18 = sshll.u32 %s1996_s19, 4  ;;  %s387_s29 = sshll.u32 %s1997_s20, 4  ;;  %s356_s18 = int_to_ptr.vmem [resolvable:$true] %s355_s18  ;;  %s388_s29 = int_to_ptr.vmem [resolvable:$true] %s387_s29 }
  0x61   : > { %s1793_s26 = scalar_lea.hbm %s2499_s4, 2048 }
  0x62   : > { %p1794_p7 = scmp.ne.s32.totalorder %s2499_s4, %s1793_s26  ;;  %p1800_p1 = scmp.lt.u32.totalorder %s1793_s26, %s2499_s4 }
  0x64   : > { %p1796_p9 = pnand %p1794_p7, %p2126_p8 }
  0x66   : > { %p1797_p3 = pneg %p1796_p9 }
  0x68   : > { %p1802_p4 = pnand %p1800_p1, %p1797_p3 }
  0x6a   : > { %1805 = shalt.err (!%p1802_p4)
}
  0x6b   : > { %s1806_s15 = scalar_lea.vmem %s356_s18, 2048  ;;  %p1814_p13 = scmp.lt.s32.totalorder %s356_s18, %s356_s18 }
  0x6c   : > { %p1807_p10 = scmp.ne.s32.totalorder %s356_s18, %s1806_s15  ;;  %p1815_p0 = scmp.lt.s32.totalorder %s1806_s15, %s1806_s15 }
  0x6e   : > { %p1809_p11 = pnand %p1807_p10, %p2126_p8  ;;  %p1816_p2 = por %p1815_p0, %p1814_p13 }
  0x70   : > { %p1810_p12 = pneg %p1809_p11 }
  0x72   : > { %p1817_p5 = pnand %p1816_p2, %p1810_p12 }
  0x74   : > { %1820 = shalt.err (!%p1817_p5)
}
  0x75   : > { %1628 = dma.hbm_to_vmem [thread:$0]  (!%p2112_p6), %s2499_s4, 2048, %s356_s18, [#allocation10], %s2511_s12, %s2511_s12, %s2512_s11  }
  0x76   : > { %s1821_s20 = scalar_lea.hbm %s2503_s8, 2048 }
  0x77   : > { %p1822_p7 = scmp.ne.s32.totalorder %s2503_s8, %s1821_s20  ;;  %p1828_p1 = scmp.lt.u32.totalorder %s1821_s20, %s2503_s8 }
  0x79   : > { %p1824_p9 = pnand %p1822_p7, %p2126_p8 }
  0x7b   : > { %p1825_p3 = pneg %p1824_p9 }
  0x7d   : > { %p1830_p4 = pnand %p1828_p1, %p1825_p3 }
  0x7f   : > { %1833 = shalt.err (!%p1830_p4)
}
  0x80   : > { %s1834_s2 = scalar_lea.vmem %s388_s29, 2048  ;;  %p1842_p13 = scmp.lt.s32.totalorder %s388_s29, %s388_s29 }
  0x81   : > { %p1835_p10 = scmp.ne.s32.totalorder %s388_s29, %s1834_s2  ;;  %p1843_p0 = scmp.lt.s32.totalorder %s1834_s2, %s1834_s2 }
  0x83   : > { %p1837_p11 = pnand %p1835_p10, %p2126_p8  ;;  %p1844_p2 = por %p1843_p0, %p1842_p13 }
  0x85   : > { %p1838_p12 = pneg %p1837_p11 }
  0x87   : > { %p1845_p5 = pnand %p1844_p2, %p1838_p12 }
  0x89   : > { %1848 = shalt.err (!%p1845_p5)
}
  0x8a   : > { %1634 = dma.hbm_to_vmem [thread:$0]  (!%p2112_p6), %s2503_s8, 2048, %s388_s29, [#allocation13], %s2511_s12, %s2511_s12, %s2512_s11  }
  0x8b   : > { %s2237_s13 = sadd.s32 1, %s1989_s24   ;;  %s38_s3 = sadd.s32 1, %s1985_s23 }
  0x8c   : > { %s35_s25 = ssub.s32 %s1989_s24, %s2237_s13  ;;  %p45_p7 = scmp.ne.s32.totalorder %s1985_s23, %s1981_s22 }
  0x8d   : > { %p36_p8 = scmp.eq.s32.totalorder %s35_s25, 0  ;;  %p46_p9 = scmp.eq.s32.totalorder %s1989_s24, 0 }
  0x8e   : > { %p51_p3 = scmp.ne.s32.totalorder %s1981_s22, %s1977_s21  ;;  %p2523_p4 = scmp.eq.s32.totalorder %s2096_s27, 0 }
  0x8f   : > { %s2248_s10 = scalar_select %p36_p8, %s1985_s23, %s38_s3  }
  0x90   : > { %p47_p1 = por %p46_p9, %p45_p7  ;;  %p2252_p10 = por %p2523_p4, %p51_p3 }
  0x91   : > { %p1647_p11 = scmp.lt.s32.totalorder %s1989_s24, 3  ;;  %s2258_s29 = sand.u32 1, %s1985_s23  }
  0x92   : > { %s1184_s19 = sshll.u32 %s1989_s24, 4  ;;  %s413_s20 = scalar_lea.vmem [#allocation3], %s2258_s29 }
  0x93   : > { %s420_s14 = sshll.u32 %s413_s20, 4  ;;  %s2265_s21 = scalar_lea.hbm %s2495_s0, %s1184_s19  ;;  %s2267_s14 = int_to_ptr.vmem [resolvable:$true] %s420_s14 }
  0x94   : > { %p2269_p6 = pnand %p1647_p11, %p47_p1  ;;  %s1185_s2 = sshll.u32 %s2258_s29, 7 }
  0x95   : > { %s427_s18 = sand.u32 1, %s1989_s24   ;;  %s2275_s15 = scalar_lea.vmem [#allocation6], %s1185_s2 }
  0x96   : > { %s438_s25 = sshll.u32 %s2275_s15, 4  ;;  %s411_s3 = scalar_lea.sflag [#allocation4], %s2258_s29  ;;  %s2306_s25 = int_to_ptr.vmem [resolvable:$true] %s438_s25 }
  0x97   : > { %s1849_s19 = scalar_lea.hbm %s2265_s21, 16  ;;  %p1851_p13 = pneg %p2269_p6 }
  0x98   : > { %p1850_p12 = scmp.ne.s32.totalorder %s2265_s21, %s1849_s19  ;;  %s1854_s26 = scalar_lea.hbm %s2495_s0, 48 }
  0x99   : > { %p1855_p5 = scmp.lt.u32.totalorder %s2265_s21, %s2495_s0  ;;  %p1856_p8 = scmp.lt.u32.totalorder %s1854_s26, %s1849_s19 }
  0x9a   : > { %p1852_p0 = pnand %p1851_p13, %p1850_p12  ;;  %p1858_p9 = scmp.lt.u32.totalorder %s1849_s19, %s2265_s21 }
  0x9b   : > { %p1857_p7 = por %p1856_p8, %p1855_p5 }
  0x9c   : > { %p1853_p2 = pneg %p1852_p0 }
  0x9d   : > { %p1859_p3 = por %p1858_p9, %p1857_p7 }
  0x9f   : > { %p1860_p1 = pnand %p1859_p3, %p1853_p2 }
  0xa1   : > { %1863 = shalt.err (!%p1860_p1)
}
  0xa2   : > { %s1864_s29 = scalar_lea.vmem %s2267_s14, 16  ;;  %s1998_s2 = smov [#allocation3]  }
  0xa3   : > { %p1865_p4 = scmp.ne.s32.totalorder %s2267_s14, %s1864_s29  ;;  %s1869_s20 = sshll.u32 %s1998_s2, 4  ;;  %s1870_s20 = int_to_ptr.vmem [resolvable:$false] %s1869_s20 }
  0xa4   : > { %s1871_s12 = scalar_lea.vmem %s1870_s20, 32  ;;  %p1872_p0 = scmp.lt.s32.totalorder %s2267_s14, %s1870_s20 }
  0xa5   : > { %p1867_p11 = pnand %p1865_p4, %p1851_p13  ;;  %p1873_p5 = scmp.lt.s32.totalorder %s1871_s12, %s1864_s29 }
  0xa7   : > { %p1868_p12 = pneg %p1867_p11  ;;  %p1874_p8 = por %p1873_p5, %p1872_p0 }
  0xa9   : > { %p1875_p7 = pnand %p1874_p8, %p1868_p12 }
  0xab   : > { %1878 = shalt.err (!%p1875_p7)
}
  0xac   : > { %1638 = dma.hbm_to_vmem [thread:$0]  (!%p2269_p6), %s2265_s21, 16, %s2267_s14, %s411_s3  }
  0xad   : > { %s1210_s11 = sshll.u32 %s1989_s24, 11  ;;  %s2316_s29 = scalar_lea.sflag [#allocation7], %s427_s18 }
  0xae   : > { %s2312_s26 = scalar_lea.hbm %s2496_s1, %s1210_s11  ;;  %s1884_s15 = scalar_lea.hbm %s2496_s1, 6144 }
  0xaf   : > { %s1879_s2 = scalar_lea.hbm %s2312_s26, 2048  ;;  %p1885_p1 = scmp.lt.u32.totalorder %s2312_s26, %s2496_s1 }
  0xb0   : > { %p1880_p2 = scmp.ne.s32.totalorder %s2312_s26, %s1879_s2  ;;  %p1886_p4 = scmp.lt.u32.totalorder %s1884_s15, %s1879_s2 }
  0xb1   : > { %p1888_p12 = scmp.lt.u32.totalorder %s1879_s2, %s2312_s26 }
  0xb2   : > { %p1882_p9 = pnand %p1880_p2, %p1851_p13  ;;  %p1887_p11 = por %p1886_p4, %p1885_p1 }
  0xb4   : > { %p1883_p3 = pneg %p1882_p9  ;;  %p1889_p0 = por %p1888_p12, %p1887_p11 }
  0xb6   : > { %p1890_p5 = pnand %p1889_p0, %p1883_p3 }
  0xb8   : > { %1893 = shalt.err (!%p1890_p5)
}
  0xb9   : > { %s1894_s24 = scalar_lea.vmem %s2306_s25, 2048  ;;  %s1999_s18 = smov [#allocation6]  }
  0xba   : > { %p1895_p8 = scmp.ne.s32.totalorder %s2306_s25, %s1894_s24  ;;  %s1899_s12 = sshll.u32 %s1999_s18, 4  ;;  %s1900_s12 = int_to_ptr.vmem [resolvable:$false] %s1899_s12 }
  0xbb   : > { %s1901_s11 = scalar_lea.vmem %s1900_s12, 4096  ;;  %p1902_p9 = scmp.lt.s32.totalorder %s2306_s25, %s1900_s12 }
  0xbc   : > { %p1897_p7 = pnand %p1895_p8, %p1851_p13  ;;  %p1903_p1 = scmp.lt.s32.totalorder %s1901_s11, %s1894_s24 }
  0xbe   : > { %p1898_p2 = pneg %p1897_p7  ;;  %p1904_p4 = por %p1903_p1, %p1902_p9 }
  0xc0   : > { %p1905_p11 = pnand %p1904_p4, %p1898_p2 }
  0xc2   : > { %1908 = shalt.err (!%p1905_p11)
}
  0xc3   : > { %s2526_s19 = smov 8   ;;  %s2527_s16 = smov 128  }
  0xc4   : > { %1641 = dma.hbm_to_vmem [thread:$0]  (!%p2269_p6), %s2312_s26, 2048, %s2306_s25, %s2316_s29, %s2527_s16, %s2527_s16, %s2526_s19  }
  0xc5   : > { %p2528_p13 = scmp.ne.s32.totalorder %s2518_s28, 0 }
  0xc6   : > { %s2348_s2 = sand.u32 (!%p2528_p13), 1, %s1981_s22  }
  0xc7   : > { %450 = sbr.rel (%p2528_p13) target bundleno = 1626 (0x65a), region = 68  ;;  %s453_s14 = scalar_lea.sflag (!%p2528_p13), [#allocation4], %s2348_s2 }
  0xc8   : > { %s455_s21 = scalar_lea.vmem (!%p2528_p13), [#allocation3], %s2348_s2 }
  0xce   : > { %1952 = dma.done.wait (%p2252_p10), %s453_s14, 16  }
  0xcf   : > { %1954 = vsyncadd (%p2252_p10), %s453_s14, 4294967280  ;;  %s460_s30 = sand.u32 1, %s2096_s27   ;;  %s1189_s25 = sshll.u32 %s2348_s2, 7 }
  0xd0   : > { %s461_s28 = scalar_lea.sflag [#allocation7], %s460_s30  ;;  %s2358_s26 = scalar_lea.vmem [#allocation6], %s1189_s25 }
  0xd1   : > { %1956 = dma.done.wait (%p2252_p10), %s461_s28, 2048  }
  0xd2   : > { %1958 = vsyncadd (%p2252_p10), %s461_s28, 4294965248  ;;  %p2529_p6 = scmp.eq.s32.totalorder %s2096_s27, 0 }
  0xd4   : > { %1960 = dma.done.wait (%p2529_p6), [#allocation7], 128   ;;  %p2530_p3 = pmov %p2529_p6 }
  0xd6   : > { %1962 = vsyncadd (%p2530_p3), [#allocation7], 4294967168  ;;  %p2531_p12 = pmov %p2530_p3 }
  0xd7   : > { %p2532_p0 = pmov %p2530_p3 }
  0xd8   : > { %1964 = dma.done.wait (%p2531_p12), [#allocation10], 4096  }
  0xd9   : > { %1966 = vsyncadd (%p2532_p0), [#allocation10], 4294963200  ;;  %p2533_p5 = pmov %p2532_p0 }
  0xda   : > { %p2534_p8 = pmov %p2532_p0 }
  0xdb   : > { %1968 = dma.done.wait (%p2533_p5), [#allocation13], 4096  }
  0xdc   : > { %1970 = vsyncadd (%p2534_p8), [#allocation13], 4294963200  ;;  %p2535_p10 = scmp.ne.s32.totalorder %s2096_s27, 0 }
  0xdd   : > { %v2000_v0 = vmov (!%p2535_p10), 0.0  }
  0xde   : > { %528 = sbr.rel (%p2535_p10) target bundleno = 229 (0xe5), region = 100  ;;  %529 = vst [vmem:[#allocation2] sm:$0xff] (!%p2535_p10), %v2000_v0 }
  0xe5 PF: > { %v541_v1 = vld [vmem:[%s2358_s26] sm:$0xff]  ;;  %v542_v2 = vld [vmem:[%s2358_s26 + $0x8] sm:$0xff]  ;;  %v543_v3 = vld [vmem:[%s2358_s26 + $0x10] sm:$0xff]  ;;  %v2001_v4 = vmov 0.0|0.0   ;;  %vm2002_vm0 = vmmov 0   ;;  %v2003_v7 = vmov 0.0   ;;  %v531_v24 = vlaneseq }
  0xe6   : > { %1471 = vmatprep.subr.bf16.mxu0 %v2001_v4  ;;  %v1472_v5 = vpack.c.bf16 %v542_v2, %v541_v1  ;;  %v544_v6 = vld [vmem:[%s2358_s26 + $0x18] sm:$0xff]  ;;  %1328 = vmatprep.mubr.msk.f32.mxu0 %vm2002_vm0, %v2003_v7  ;;  %v545_v9 = vld [vmem:[%s2358_s26 + $0x20] sm:$0xff]  ;;  %v546_v10 = vld [vmem:[%s2358_s26 + $0x28] sm:$0xff]  ;;  %v2004_v30 = vmov 1.0   ;;  %p1199_p7 = scmp.ne.s32.totalorder %s2096_s27, 2 }
  0xe7   : > { %v1475_v8 = vpack.c.bf16 %v544_v6, %v543_v3  ;;  %v1478_v11 = vpack.c.bf16 %v546_v10, %v545_v9  ;;  %v547_v12 = vld [vmem:[%s2358_s26 + $0x30] sm:$0xff]  ;;  %v548_v13 = vld [vmem:[%s2358_s26 + $0x38] sm:$0xff]  ;;  %v549_v15 = vld [vmem:[%s2358_s26 + $0x40] sm:$0xff]  ;;  %v532_v28 = vshrl.u32 %v531_v24, 7  ;;  %v2005_v38 = vmov (!%p1199_p7), 4   ;;  %s2536_s11 = sld [smem:[#allocation24_spill]] (!%p1199_p7) }
  0xe8   : > { %1473 = vmatpush3.bf16.msra.mxu0 %v1472_v5  ;;  %v1481_v14 = vpack.c.bf16 %v548_v13, %v547_v12  ;;  %v550_v16 = vld [vmem:[%s2358_s26 + $0x48] sm:$0xff]  ;;  %v551_v18 = vld [vmem:[%s2358_s26 + $0x50] sm:$0xff]  ;;  %v552_v19 = vld [vmem:[%s2358_s26 + $0x58] sm:$0xff]  ;;  %1704 = vset.pattern.permute.xlu0 (!%p1199_p7), %v2005_v38  ;;  %v2006_v40 = vmov (!%p1199_p7), 0.0|0.0   ;;  %vm2007_vm2 = vmmov (!%p1199_p7), 0   ;;  %v2008_v55 = vmov (!%p1199_p7), 0.0  }
  0xe9   : > { %1474 = vmatprep.subr.bf16.mxu0 %v2001_v4  ;;  %v1484_v17 = vpack.c.bf16 %v550_v16, %v549_v15  ;;  %v1487_v20 = vpack.c.bf16 %v552_v19, %v551_v18  ;;  %v553_v21 = vld [vmem:[%s2358_s26 + $0x60] sm:$0xff]  ;;  %v554_v22 = vld [vmem:[%s2358_s26 + $0x68] sm:$0xff]  ;;  %v555_v25 = vld [vmem:[%s2358_s26 + $0x70] sm:$0xff]  ;;  %1519 = vmatprep.subr.bf16.mxu1 (!%p1199_p7), %v2006_v40  ;;  %s2537_s2 = sld [smem:[#allocation25_spill]] (!%p1199_p7) }
  0xea   : > { %v1490_v23 = vpack.c.bf16 %v554_v22, %v553_v21  ;;  %v556_v26 = vld [vmem:[%s2358_s26 + $0x78] sm:$0xff]  ;;  %v1196_v29 = vld [vmem:[%s455_s21] ss:$0 sm:$0xff]  ;;  %v643_v36 = vld [vmem:[#allocation9] sm:$0xff] (!%p1199_p7)  ;;  %1398 = vmatprep.mubr.msk.f32.mxu1 (!%p1199_p7), %vm2007_vm2, %v2008_v55 }
  0xeb   : > { %v1493_v27 = vpack.c.bf16 %v556_v26, %v555_v25  ;;  %vm537_vm1 = vcmp.eq.s32.totalorder %v532_v28, %v1196_v29  ;;  %v540_v31 = vld [vmem:[#allocation2] sm:$0xff]  ;;  %v659_v42 = vld [vmem:[#allocation11] sm:$0xff] (!%p1199_p7)  ;;  %v646_v46 = vld [vmem:[#allocation9 + $0x18] sm:$0xff] (!%p1199_p7) }
  0xec   : > { %1476 = vmatpush3.bf16.msra.mxu0 %v1475_v8  ;;  %v644_v37 = vld [vmem:[#allocation9 + $0x8] sm:$0xff] (!%p1199_p7)  ;;  %v645_v44 = vld [vmem:[#allocation9 + $0x10] sm:$0xff] (!%p1199_p7)  ;;  %v662_v48 = vld [vmem:[#allocation11 + $0x18] sm:$0xff] (!%p1199_p7) }
  0xed   : > { %1477 = vmatprep.subr.bf16.mxu0 %v2001_v4  ;;  %v1520_v41 = vpack.c.bf16 (!%p1199_p7), %v644_v37, %v643_v36  ;;  %v660_v43 = vld [vmem:[#allocation11 + $0x8] sm:$0xff] (!%p1199_p7)  ;;  %v661_v47 = vld [vmem:[#allocation11 + $0x10] sm:$0xff] (!%p1199_p7)  ;;  %v1523_v49 = vpack.c.bf16 (!%p1199_p7), %v646_v46, %v645_v44  ;;  %v647_v51 = vld [vmem:[#allocation9 + $0x20] sm:$0xff] (!%p1199_p7) }
  0xee   : > { %v1496_v45 = vpack.c.bf16 (!%p1199_p7), %v660_v43, %v659_v42  ;;  %v1499_v50 = vpack.c.bf16 (!%p1199_p7), %v662_v48, %v661_v47  ;;  %v648_v52 = vld [vmem:[#allocation9 + $0x28] sm:$0xff] (!%p1199_p7)  ;;  %v663_v53 = vld [vmem:[#allocation11 + $0x20] sm:$0xff] (!%p1199_p7)  ;;  %v649_v58 = vld [vmem:[#allocation9 + $0x30] sm:$0xff] (!%p1199_p7) }
  0xef   : > { %1521 = vmatpush3.bf16.msra.mxu1 (!%p1199_p7), %v1520_v41  ;;  %v664_v54 = vld [vmem:[#allocation11 + $0x28] sm:$0xff] (!%p1199_p7)  ;;  %v1526_v56 = vpack.c.bf16 (!%p1199_p7), %v648_v52, %v647_v51  ;;  %v650_v59 = vld [vmem:[#allocation9 + $0x38] sm:$0xff] (!%p1199_p7)  ;;  %v665_v60 = vld [vmem:[#allocation11 + $0x30] sm:$0xff] (!%p1199_p7) }
  0xf0   : > { %1479 = vmatpush3.bf16.msra.mxu0 %v1478_v11  ;;  %1522 = vmatprep.subr.bf16.mxu1 (!%p1199_p7), %v2006_v40  ;;  %v1502_v57 = vpack.c.bf16 (!%p1199_p7), %v664_v54, %v663_v53  ;;  %v666_v61 = vld [vmem:[#allocation11 + $0x38] sm:$0xff] (!%p1199_p7)  ;;  %v1529_v62 = vpack.c.bf16 (!%p1199_p7), %v650_v59, %v649_v58  ;;  %v651_v0 = vld [vmem:[#allocation9 + $0x40] sm:$0xff] (!%p1199_p7)  ;;  %v652_v1 = vld [vmem:[#allocation9 + $0x48] sm:$0xff] (!%p1199_p7) }
  0xf1   : > { %1480 = vmatprep.subr.bf16.mxu0 %v2001_v4  ;;  %v1505_v63 = vpack.c.bf16 (!%p1199_p7), %v666_v61, %v665_v60  ;;  %v667_v2 = vld [vmem:[#allocation11 + $0x40] sm:$0xff] (!%p1199_p7)  ;;  %v668_v3 = vld [vmem:[#allocation11 + $0x48] sm:$0xff] (!%p1199_p7)  ;;  %v653_v6 = vld [vmem:[#allocation9 + $0x50] sm:$0xff] (!%p1199_p7) }
  0xf2   : > { %v1508_v5 = vpack.c.bf16 (!%p1199_p7), %v668_v3, %v667_v2  ;;  %v654_v7 = vld [vmem:[#allocation9 + $0x58] sm:$0xff] (!%p1199_p7)  ;;  %v669_v8 = vld [vmem:[#allocation11 + $0x50] sm:$0xff] (!%p1199_p7)  ;;  %v655_v12 = vld [vmem:[#allocation9 + $0x60] sm:$0xff] (!%p1199_p7) }
  0xf3   : > { %1524 = vmatpush3.bf16.msra.mxu1 (!%p1199_p7), %v1523_v49  ;;  %v670_v9 = vld [vmem:[#allocation11 + $0x58] sm:$0xff] (!%p1199_p7)  ;;  %v1535_v10 = vpack.c.bf16 (!%p1199_p7), %v654_v7, %v653_v6  ;;  %v656_v13 = vld [vmem:[#allocation9 + $0x68] sm:$0xff] (!%p1199_p7)  ;;  %v657_v18 = vld [vmem:[#allocation9 + $0x70] sm:$0xff] (!%p1199_p7) }
  0xf4   : > { %1482 = vmatpush3.bf16.msra.mxu0 %v1481_v14  ;;  %1525 = vmatprep.subr.bf16.mxu1 (!%p1199_p7), %v2006_v40  ;;  %v1511_v11 = vpack.c.bf16 (!%p1199_p7), %v670_v9, %v669_v8  ;;  %v671_v14 = vld [vmem:[#allocation11 + $0x60] sm:$0xff] (!%p1199_p7)  ;;  %v672_v15 = vld [vmem:[#allocation11 + $0x68] sm:$0xff] (!%p1199_p7)  ;;  %v1538_v16 = vpack.c.bf16 (!%p1199_p7), %v656_v13, %v655_v12  ;;  %v658_v19 = vld [vmem:[#allocation9 + $0x78] sm:$0xff] (!%p1199_p7) }
  0xf5   : > { %1483 = vmatprep.subr.bf16.mxu0 %v2001_v4  ;;  %v674_v21 = vld [vmem:[#allocation11 + $0x78] sm:$0xff] (!%p1199_p7)  ;;  %v1541_v22 = vpack.c.bf16 (!%p1199_p7), %v658_v19, %v657_v18  ;;  %v827_v28 = vld [vmem:[#allocation12 + $0x8] sm:$0xff] (!%p1199_p7)  ;;  %v830_v36 = vld [vmem:[#allocation12 + $0x20] sm:$0xff] (!%p1199_p7) }
  0xf6   : > { %v642_v25 = vld [vmem:[#allocation8] sm:$0xff] (!%p1199_p7)  ;;  %v831_v37 = vld [vmem:[#allocation12 + $0x28] sm:$0xff] (!%p1199_p7)  ;;  %v834_v42 = vld [vmem:[#allocation12 + $0x40] sm:$0xff] (!%p1199_p7) }
  0xf7   : > { %1527 = vmatpush3.bf16.msra.mxu1 (!%p1199_p7), %v1526_v56  ;;  %v1550_v38 = vpack.c.bf16 (!%p1199_p7), %v831_v37, %v830_v36  ;;  %v833_v41 = vld [vmem:[#allocation12 + $0x38] sm:$0xff] (!%p1199_p7)  ;;  %v835_v43 = vld [vmem:[#allocation12 + $0x48] sm:$0xff] (!%p1199_p7)  ;;  %v838_v48 = vld [vmem:[#allocation12 + $0x60] sm:$0xff] (!%p1199_p7)  ;;  %v1022_v37 = vand.u32 (!%p1199_p7), 127, %v531_v24 }
  0xf8   : > { %1485 = vmatpush3.bf16.msra.mxu0 %v1484_v17  ;;  %1528 = vmatprep.subr.bf16.mxu1 (!%p1199_p7), %v2006_v40  ;;  %v1514_v17 = vpack.c.bf16 (!%p1199_p7), %v672_v15, %v671_v14  ;;  %v1556_v44 = vpack.c.bf16 (!%p1199_p7), %v835_v43, %v834_v42  ;;  %v837_v46 = vld [vmem:[#allocation12 + $0x58] sm:$0xff] (!%p1199_p7)  ;;  %v839_v49 = vld [vmem:[#allocation12 + $0x68] sm:$0xff] (!%p1199_p7)  ;;  %v840_v51 = vld [vmem:[#allocation12 + $0x70] sm:$0xff] (!%p1199_p7) }
  0xf9   : > { %1486 = vmatprep.subr.bf16.mxu0 %v2001_v4  ;;  %v841_v52 = vld [vmem:[#allocation12 + $0x78] sm:$0xff] (!%p1199_p7)  ;;  %v922_v54 = vld [vmem:[#allocation14] sm:$0xff] (!%p1199_p7)  ;;  %v923_v56 = vld [vmem:[#allocation14 + $0x8] sm:$0xff] (!%p1199_p7)  ;;  %vm1023_vm6 = vcmp.lt.s32.totalorder (!%p1199_p7), %v1022_v37, 16 }
  0xfa   : > { %v1565_v53 = vpack.c.bf16 (!%p1199_p7), %v841_v52, %v840_v51  ;;  %v1568_v58 = vpack.c.bf16 (!%p1199_p7), %v923_v56, %v922_v54  ;;  %v925_v59 = vld [vmem:[#allocation14 + $0x18] sm:$0xff] (!%p1199_p7)  ;;  %v926_v61 = vld [vmem:[#allocation14 + $0x20] sm:$0xff] (!%p1199_p7)  ;;  %v931_v6 = vld [vmem:[#allocation14 + $0x48] sm:$0xff] (!%p1199_p7) }
  0xfb   : > { %1530 = vmatpush3.bf16.msra.mxu1 (!%p1199_p7), %v1529_v62  ;;  %v927_v62 = vld [vmem:[#allocation14 + $0x28] sm:$0xff] (!%p1199_p7)  ;;  %v932_v8 = vld [vmem:[#allocation14 + $0x50] sm:$0xff] (!%p1199_p7)  ;;  %v933_v9 = vld [vmem:[#allocation14 + $0x58] sm:$0xff] (!%p1199_p7) }
  0xfc   : > { %1488 = vmatpush3.bf16.msra.mxu0 %v1487_v20  ;;  %1531 = vmatprep.subr.bf16.mxu1 (!%p1199_p7), %v2006_v40  ;;  %v673_v20 = vld [vmem:[#allocation11 + $0x70] sm:$0xff] (!%p1199_p7)  ;;  %v935_v12 = vld [vmem:[#allocation14 + $0x68] sm:$0xff] (!%p1199_p7) }
  0xfd   : > { %1489 = vmatprep.subr.bf16.mxu0 %v2001_v4  ;;  %v1200_v15 = vld [vmem:[%s2500_s5] ss:$0 sm:$0xff] (!%p1199_p7) }
  0xfe   : > { %v1205_v24 = vld [vmem:[%s2537_s2] ss:$0 sm:$0xff] (!%p1199_p7) }
 0x100   : > { %1491 = vmatpush3.bf16.msra.mxu0 %v1490_v23  ;;  %v1517_v23 = vpack.c.bf16 (!%p1199_p7), %v674_v21, %v673_v20  ;;  %v936_v21 = vld [vmem:[#allocation14 + $0x70] sm:$0xff] (!%p1199_p7) }
 0x101   : > { %1492 = vmatprep.subr.bf16.mxu0 %v2001_v4  ;;  %v1532_v4 = vpack.c.bf16 (!%p1199_p7), %v652_v1, %v651_v0  ;;  %v928_v0 = vld [vmem:[#allocation14 + $0x30] sm:$0xff] (!%p1199_p7)  ;;  %v929_v1 = vld [vmem:[#allocation14 + $0x38] sm:$0xff] (!%p1199_p7) }
 0x103   : > { %1533 = vmatpush3.bf16.msra.mxu1 (!%p1199_p7), %v1532_v4  ;;  %v1577_v4 = vpack.c.bf16 (!%p1199_p7), %v929_v1, %v928_v0 }
 0x104   : > { %1494 = vmatpush3.bf16.msra.mxu0 %v1493_v27  ;;  %1534 = vmatprep.subr.bf16.mxu1 (!%p1199_p7), %v2006_v40  ;;  %v826_v27 = vld [vmem:[#allocation12] sm:$0xff] (!%p1199_p7) }
 0x105   : > { %1495 = vmatprep.subr.bf16.mxu0 (!%p1199_p7), %v2006_v40 }
 0x107   : > { %1329 = vmatmul.mubr.msk.f32.vlgmr.msra.gmra.mrb[0].mxu0 %vm537_vm1, %v2004_v30  ;;  %1536 = vmatpush3.bf16.msra.mxu1 (!%p1199_p7), %v1535_v10  ;;  %v1544_v30 = vpack.c.bf16 (!%p1199_p7), %v827_v28, %v826_v27  ;;  %v1583_v10 = vpack.c.bf16 (!%p1199_p7), %v933_v9, %v932_v8 }
 0x108   : > { %1497 = vmatpush3.bf16.msra.mxu0 (!%p1199_p7), %v1496_v45  ;;  %1363 = vmatprep.mubr.msk.f32.mxu0 (!%p1199_p7), %vm2007_vm2, %v2008_v55  ;;  %v836_v45 = vld [vmem:[#allocation12 + $0x50] sm:$0xff] (!%p1199_p7) }
 0x109   : > { %1498 = vmatprep.subr.bf16.mxu0 (!%p1199_p7), %v2006_v40  ;;  %1537 = vmatprep.subr.bf16.mxu1 (!%p1199_p7), %v2006_v40  ;;  %v1559_v47 = vpack.c.bf16 (!%p1199_p7), %v837_v46, %v836_v45 }
 0x10b   : > { %1539 = vmatpush3.bf16.msra.mxu1 (!%p1199_p7), %v1538_v16 }
 0x10c   : > { %1500 = vmatpush3.bf16.msra.mxu0 (!%p1199_p7), %v1499_v50  ;;  %1540 = vmatprep.subr.bf16.mxu1 (!%p1199_p7), %v2006_v40  ;;  %v1562_v50 = vpack.c.bf16 (!%p1199_p7), %v839_v49, %v838_v48  ;;  %v1204_v48 = vld [vmem:[%s2536_s11] ss:$0 sm:$0xff] (!%p1199_p7) }
 0x10d   : > { %1501 = vmatprep.subr.bf16.mxu0 (!%p1199_p7), %v2006_v40 }
 0x10f   : > { %1542 = vmatpush3.bf16.msra.mxu1 (!%p1199_p7), %v1541_v22  ;;  %v937_v22 = vld [vmem:[#allocation14 + $0x78] sm:$0xff] (!%p1199_p7) }
 0x110   : > { %1503 = vmatpush3.bf16.msra.mxu0 (!%p1199_p7), %v1502_v57  ;;  %1567 = vmatprep.subr.bf16.mxu1 (!%p1199_p7), %v2006_v40  ;;  %v924_v57 = vld [vmem:[#allocation14 + $0x10] sm:$0xff] (!%p1199_p7) }
 0x111   : > { %1504 = vmatprep.subr.bf16.mxu0 (!%p1199_p7), %v2006_v40  ;;  %v1571_v60 = vpack.c.bf16 (!%p1199_p7), %v925_v59, %v924_v57 }
 0x112   : > { %1399 = vmatmul.mubr.f32.vlgmr.msra.gmra.mrb[0].mxu1 (!%p1199_p7), %v642_v25 }
 0x113   : > { %1468 = vmatprep.mubr.msk.f32.mxu1 (!%p1199_p7), %vm2007_vm2, %v2008_v55  ;;  %1569 = vmatpush3.bf16.msra.mxu1 (!%p1199_p7), %v1568_v58 }
 0x114   : > { %1506 = vmatpush3.bf16.msra.mxu0 (!%p1199_p7), %v1505_v63  ;;  %1570 = vmatprep.subr.bf16.mxu1 (!%p1199_p7), %v2006_v40  ;;  %v1574_v63 = vpack.c.bf16 (!%p1199_p7), %v927_v62, %v926_v61 }
 0x115   : > { %1507 = vmatprep.subr.bf16.mxu0 (!%p1199_p7), %v2006_v40 }
 0x117   : > { %1572 = vmatpush3.bf16.msra.mxu1 (!%p1199_p7), %v1571_v60 }
 0x118   : > { %1509 = vmatpush3.bf16.msra.mxu0 (!%p1199_p7), %v1508_v5  ;;  %1573 = vmatprep.subr.bf16.mxu1 (!%p1199_p7), %v2006_v40  ;;  %v930_v5 = vld [vmem:[#allocation14 + $0x40] sm:$0xff] (!%p1199_p7) }
 0x119   : > { %1510 = vmatprep.subr.bf16.mxu0 (!%p1199_p7), %v2006_v40  ;;  %v1580_v7 = vpack.c.bf16 (!%p1199_p7), %v931_v6, %v930_v5 }
 0x11b   : > { %1575 = vmatpush3.bf16.msra.mxu1 (!%p1199_p7), %v1574_v63 }
 0x11c   : > { %1512 = vmatpush3.bf16.msra.mxu0 (!%p1199_p7), %v1511_v11  ;;  %1576 = vmatprep.subr.bf16.mxu1 (!%p1199_p7), %v2006_v40  ;;  %v934_v11 = vld [vmem:[#allocation14 + $0x60] sm:$0xff] (!%p1199_p7) }
 0x11d   : > { %1513 = vmatprep.subr.bf16.mxu0 (!%p1199_p7), %v2006_v40  ;;  %v1586_v13 = vpack.c.bf16 (!%p1199_p7), %v935_v12, %v934_v11 }
 0x11f   : > { %1578 = vmatpush3.bf16.msra.mxu1 (!%p1199_p7), %v1577_v4 }
 0x120   : > { %1515 = vmatpush3.bf16.msra.mxu0 (!%p1199_p7), %v1514_v17  ;;  %1579 = vmatprep.subr.bf16.mxu1 (!%p1199_p7), %v2006_v40 }
 0x121   : > { %1516 = vmatprep.subr.bf16.mxu0 (!%p1199_p7), %v2006_v40 }
 0x123   : > { %1581 = vmatpush3.bf16.msra.mxu1 (!%p1199_p7), %v1580_v7 }
 0x124   : > { %1518 = vmatpush3.bf16.msra.mxu0 (!%p1199_p7), %v1517_v23  ;;  %1582 = vmatprep.subr.bf16.mxu1 (!%p1199_p7), %v2006_v40  ;;  %v1589_v23 = vpack.c.bf16 (!%p1199_p7), %v937_v22, %v936_v21 }
 0x125   : > { %1543 = vmatprep.subr.bf16.mxu0 (!%p1199_p7), %v2006_v40 }
 0x127   : > { %1584 = vmatpush3.bf16.msra.mxu1 (!%p1199_p7), %v1583_v10 }
 0x128   : > { %1585 = vmatprep.subr.bf16.mxu1 (!%p1199_p7), %v2006_v40 }
 0x12b   : > { %1587 = vmatpush3.bf16.msra.mxu1 (!%p1199_p7), %v1586_v13 }
 0x12c   : > { %1588 = vmatprep.subr.bf16.mxu1 (!%p1199_p7), %v2006_v40 }
 0x12f   : > { %1590 = vmatpush3.bf16.msra.mxu1 (!%p1199_p7), %v1589_v23 }
 0x1d7   : > { %632 = sbr.rel (%p1199_p7) target bundleno = 1595 (0x63b), region = 104 }
 0x1da   : > { %v623_v32 = vpop.f32.mrb[0].mxu0 }
 0x1db   : > { %v627_v33 = vadd.f32 %v623_v32, %v540_v31  ;;  %v1330_v34 = vpop.f32.mrb[1].mxu0  ;;  %v828_v32 = vld [vmem:[#allocation12 + $0x10] sm:$0xff] (!%p1199_p7) }
 0x1dd   : > { %628 = vst [vmem:[#allocation2] sm:$0xff] %v627_v33  ;;  %v829_v33 = vld [vmem:[#allocation12 + $0x18] sm:$0xff] (!%p1199_p7) }
 0x1de   : > { %v1547_v34 = vpack.c.bf16 %v829_v33, %v828_v32 }
 0x1e4   : > { %v2398_v35 = vld [vmem:[#allocation2] sm:$0xff] }
 0x1e5   : > { %v634_v39 = vmax.f32 %v2398_v35, 1.0  ;;  %v811_v2 = vpop.f32.mrb[0].mxu1 }
 0x1e6   : > { %v1400_v3 = vpop.f32.mrb[1].mxu1 }
 0x1e7   : > { %637 = vperm.xlu0 %1704, %v634_v39   ;;  %v832_v39 = vld [vmem:[#allocation12 + $0x30] sm:$0xff] }
 0x266   : > { %v638_v26 = vpop.permute.xlu0 %637 }
 0x267   : > { %1705 = vrcp.f32 %v638_v26 }
 0x271   : > { %v1706_v29 = vpop.eup %1705 }
 0x272   : > { %v641_v31 = vmul.f32 %v1706_v29, %v2398_v35  ;;  %v1553_v35 = vpack.c.bf16 %v833_v41, %v832_v39  ;;  %v1203_v41 = vsel %vm1023_vm6, 1.0, %v2008_v55 }
 0x274   : > { %1364 = vmatmul.mubr.f32.vlgmr.msra.gmra.mrb[0].mxu0 %v641_v31 }
 0x275   : > { %1545 = vmatpush3.bf16.msra.mxu0 %v1544_v30  ;;  %1433 = vmatprep.mubr.msk.f32.mxu0 %vm2007_vm2, %v2008_v55  ;;  %v1202_v30 = vld [vmem:[%s2504_s9] ss:$0 sm:$0xff] }
 0x276   : > { %1546 = vmatprep.subr.bf16.mxu0 %v2006_v40 }
 0x279   : > { %1548 = vmatpush3.bf16.msra.mxu0 %v1547_v34 }
 0x27a   : > { %1549 = vmatprep.subr.bf16.mxu0 %v2006_v40 }
 0x27d   : > { %1551 = vmatpush3.bf16.msra.mxu0 %v1550_v38 }
 0x27e   : > { %1552 = vmatprep.subr.bf16.mxu0 %v2006_v40 }
 0x281   : > { %1554 = vmatpush3.bf16.msra.mxu0 %v1553_v35 }
 0x282   : > { %1555 = vmatprep.subr.bf16.mxu0 %v2006_v40 }
 0x285   : > { %1557 = vmatpush3.bf16.msra.mxu0 %v1556_v44 }
 0x286   : > { %1558 = vmatprep.subr.bf16.mxu0 %v2006_v40 }
 0x289   : > { %1560 = vmatpush3.bf16.msra.mxu0 %v1559_v47 }
 0x28a   : > { %1561 = vmatprep.subr.bf16.mxu0 %v2006_v40 }
 0x28d   : > { %1563 = vmatpush3.bf16.msra.mxu0 %v1562_v50 }
 0x28e   : > { %1564 = vmatprep.subr.bf16.mxu0 %v2006_v40  ;;  %v1201_v40 = vld [vmem:[%s2502_s7] ss:$0 sm:$0xff] }
 0x291   : > { %1566 = vmatpush3.bf16.msra.mxu0 %v1565_v53 }
 0x347   : > { %v741_v14 = vpop.f32.mrb[0].mxu0 }
 0x348   : > { %v812_v16 = vadd.f32 %v811_v2, %v741_v14  ;;  %v1365_v17 = vpop.f32.mrb[1].mxu0 }
 0x34a   : > { %v822_v18 = vadd.f32 %v1200_v15, %v812_v16 }
 0x34c   : > { %v824_v19 = vmul.f32 0.01, %v822_v18  ;;  %vm823_vm3 = vcmp.ge.f32.partialorder %v822_v18, 0.0 }
 0x34e   : > { %v825_v20 = vsel %vm823_vm3, %v822_v18, %v824_v19 }
 0x34f   : > { %1434 = vmatmul.mubr.f32.vlgmr.msra.gmra.mrb[2].mxu0 %v825_v20 }
 0x422   : > { %v915_v25 = vpop.f32.mrb[2].mxu0 }
 0x423   : > { %v916_v26 = vadd.f32 %v1201_v40, %v915_v25  ;;  %v1435_v27 = vpop.f32.mrb[3].mxu0 }
 0x425   : > { %vm919_vm4 = vcmp.ge.f32.partialorder %v916_v26, 0.0  ;;  %v920_v28 = vmul.f32 0.01, %v916_v26 }
 0x427   : > { %v921_v29 = vsel %vm919_vm4, %v916_v26, %v920_v28 }
 0x428   : > { %1469 = vmatmul.mubr.f32.vlgmr.msra.gmra.mrb[2].mxu1 %v921_v29 }
 0x4fb   : > { %v1011_v31 = vpop.f32.mrb[2].mxu1 }
 0x4fc   : > { %v1012_v32 = vadd.f32 %v1202_v30, %v1011_v31  ;;  %v1470_v33 = vpop.f32.mrb[3].mxu1 }
 0x4fe   : > { %vm1015_vm5 = vcmp.ge.f32.partialorder %v1012_v32, 0.0  ;;  %v1016_v34 = vmul.f32 0.01, %v1012_v32 }
 0x500   : > { %v1017_v36 = vsel %vm1015_vm5, %v1012_v32, %v1016_v34 }
 0x501   : > { %1018 = vadd.xlane.f32.xlu0 %v1017_v36 }
 0x58e   : > { %v1019_v38 = vpop.xlane.xlu0 %1018 }
 0x58f   : > { %v1020_v39 = vmul.f32 0.0625, %v1019_v38 }
 0x591   : > { %v1026_v35 = vsub.f32 %v1017_v36, %v1020_v39 }
 0x593   : > { %v1027_v42 = vmul.f32 %v1203_v41, %v1026_v35 }
 0x595   : > { %v1028_v43 = vmul.f32 %v1027_v42, %v1027_v42 }
 0x597   : > { %1029 = vadd.xlane.f32.xlu1 %v1028_v43 }
 0x624   : > { %v1030_v44 = vpop.xlane.xlu1 %1029 }
 0x625   : > { %v1031_v45 = vmul.f32 0.0625, %v1030_v44 }
 0x627   : > { %v1032_v46 = vadd.f32 1e-05, %v1031_v45 }
 0x629   : > { %1707 = vrsqrt.f32 %v1032_v46 }
 0x633   : > { %v1708_v47 = vpop.eup %1707 }
 0x634   : > { %v1034_v49 = vmul.f32 %v1708_v47, %v1027_v42 }
 0x636   : > { %v1042_v50 = vmul.f32 %v1204_v48, %v1034_v49 }
 0x638   : > { %v1050_v55 = vadd.f32 %v1205_v24, %v1042_v50 }
 0x63a   : > { %1051 = vst [vmem:[#allocation15] sm:$0xff] %v1050_v55 }
 0x63b PF: > { %p1653_p2 = scmp.eq.s32.totalorder %s2096_s27, 2  ;;  %s2009_s14 = smov [#allocation15]  }
 0x63c   : > { %s1059_s21 = sshll.u32 %s2009_s14, 4  ;;  %s1060_s21 = int_to_ptr.vmem [resolvable:$true] %s1059_s21 }
 0x63d   : > { %s1909_s30 = scalar_lea.vmem %s1060_s21, 128  ;;  %p1916_p11 = scmp.lt.s32.totalorder %s1060_s21, %s1060_s21 }
 0x63e   : > { %p1910_p9 = scmp.ne.s32.totalorder %s1060_s21, %s1909_s30  ;;  %p1917_p13 = scmp.lt.s32.totalorder %s1909_s30, %s1909_s30 }
 0x640   : > { %p1911_p1 = pnand %p1910_p9, %p1653_p2  ;;  %p1918_p6 = por %p1917_p13, %p1916_p11 }
 0x642   : > { %p1912_p4 = pneg %p1911_p1 }
 0x644   : > { %p1919_p3 = pnand %p1918_p6, %p1912_p4 }
 0x646   : > { %1922 = shalt.err (!%p1919_p3)
}
 0x647   : > { %s2538_s26 = sld [smem:[#allocation26_spill]] }
 0x64d   : > { %s1923_s17 = scalar_lea.hbm %s2538_s26, 128 }
 0x64e   : > { %p1924_p12 = scmp.ne.s32.totalorder %s2538_s26, %s1923_s17  ;;  %p1929_p8 = scmp.lt.u32.totalorder %s1923_s17, %s2538_s26 }
 0x650   : > { %p1925_p0 = pnand %p1924_p12, %p1653_p2 }
 0x652   : > { %p1926_p5 = pneg %p1925_p0 }
 0x654   : > { %p1931_p10 = pnand %p1929_p8, %p1926_p5 }
 0x656   : > { %1934 = shalt.err (!%p1931_p10)
}
 0x657   : > { %1616 = dma.vmem_to_hbm [thread:$0]  (%p1653_p2), %s1060_s21, 128, %s2538_s26, [#allocation5]  }
 0x658   : > { %1972 = dma.done.wait (%p1653_p2), [#allocation5], 128  }
 0x659   : > { %1974 = vsyncadd (%p1653_p2), [#allocation5], 4294967168 }
 0x65a PF: > { %p28_p7 = scmp.ge.s32.totalorder %s2237_s13, 5   ;;  %s2539_s21 = smov %s1981_s22 }
 0x65b   : > { %s2540_s22 = smov %s1985_s23  ;;  %s2541_s23 = smov %s2248_s10 }
 0x65c   : > { %s2542_s24 = smov %s2237_s13  ;;  %30 = sbr.rel (!%p28_p7) target bundleno = 14 (0xe), region = 146 }
 0x663   :  { %1072 = vsyncpa [#allocation4], 1 }
 0x664   :  { %1074 = vsyncpa [#allocation4 + $0x1], 1 }
 0x665   :  { %1075 = vsyncpa [#allocation7], 1 }
 0x666   :  { %1077 = vsyncpa [#allocation7 + $0x1], 1 }
 0x667   :  { %1078 = vsyncpa [#allocation10], 1 }
 0x668   :  { %1079 = vsyncpa [#allocation13], 1 }
 0x669   :  { %1080 = vsyncpa [#allocation5], 1 }
 0x66a   :  { %1082 = vsyncpa [#allocation5 + $0x1], 1 }

</bundles_post_ra>
